<compile_context>
chip_gen: v7x
topology: tpu7x:2x2x1
jax: 0.10.0
libtpu: 0.0.40
codegen_flags: <defaults>
</compile_context>

<pallas_src>
import functools

import jax
import jax.numpy as jnp
from jax.experimental import pallas as pl
from jax.experimental.pallas import tpu as pltpu

_NUM_CORES = 2  # leading "parallel" grid axis; real split on v7x megacore.


def _round_up(v, m):
    return ((v + m - 1) // m) * m


def _dala_kernel(gamma_ref, x_ref, m_ref, cid_ref, tgt_ref, w_ref, out_ref,
                 acc_ref, *, num_rows, inv_n, tiles_per_core):
    core = pl.program_id(0)
    j = pl.program_id(1)
    tn, _ = x_ref.shape

    @pl.when(j == 0)
    def _():
        acc_ref[...] = jnp.zeros_like(acc_ref)

    # x_m = x + m_list (broadcast [TN,C] + [1,C]); upcast for stability so
    # bf16 logits/weights can be fed to halve HBM read bytes.
    x_m = x_ref[...].astype(jnp.float32) + m_ref[...].astype(jnp.float32)

    # Row-validity mask from the *nominal* tile index.  The index_map clamps
    # overhanging tiles (odd tile counts / ragged tail) onto the last real
    # tile, so those rows land here with row_valid == False and contribute 0.
    row0 = (core * tiles_per_core + j) * tn
    row_ids = row0 + jax.lax.broadcasted_iota(jnp.int32, (tn, 1), 0)
    row_valid = row_ids < num_rows

    # Target gather without a one-hot and without per-step iota regeneration:
    # resident (1,C) class-id row compared against the (TN,1) label column.
    tgt_mask = cid_ref[...] == tgt_ref[...]                      # (TN, C)

    # Numerically stable log-sum-exp per row over the true C classes.
    row_max = jnp.max(x_m, axis=1, keepdims=True)                # (TN, 1)
    lse = row_max + jnp.log(
        jnp.sum(jnp.exp(x_m - row_max), axis=1, keepdims=True))
    tgt_logit = jnp.sum(jnp.where(tgt_mask, x_m, 0.0), axis=1, keepdims=True)
    ce_row = lse - tgt_logit                                     # (TN, 1)

    # Entropy regularizer rows: sum_c w * log(w + 1e-20).
    # TODO(synk): on v6e/v7x a bf16 log path would relieve the EUP when bf16
    # inputs are fed; kept in f32 here so the same kernel is v5e-safe.
    w = w_ref[...].astype(jnp.float32)
    ent_row = jnp.sum(w * jnp.log(w + 1e-20), axis=1, keepdims=True)

    # Single combined column -> one cross-sublane reduce per step.  Invalid /
    # out-of-bounds rows (possibly NaN garbage) are select-discarded, never
    # multiplied, so no NaN can leak into the accumulator.
    gamma = gamma_ref[0]
    contrib = jnp.where(row_valid, inv_n * ce_row - gamma * ent_row, 0.0)
    acc_ref[...] += jnp.sum(contrib, keepdims=True)              # (1, 1)

    @pl.when(j == pl.num_programs(1) - 1)
    def _():
        # Lane-dense per-core partial; the wrapper sums the _NUM_CORES blocks.
        out_ref[...] = jnp.broadcast_to(acc_ref[...], out_ref.shape)


@functools.partial(jax.jit, static_argnames=("block_rows",))
def dala_loss(x, m_list, target, weights, gamma, *, block_rows=None):
    n, c = x.shape
    in_itemsize = max(jnp.dtype(x.dtype).itemsize,
                      jnp.dtype(weights.dtype).itemsize)
    sub = 8 if in_itemsize >= 4 else (16 if in_itemsize == 2 else 32)

    if block_rows is None:
        # Size the row tile so one f32 working block is ~2 MiB: big enough to
        # amortize per-step grid overhead (85%+ of HBM roofline needs 512+
        # wide tiles), small enough for v7x's 64 MiB VMEM with double buffers.
        block_rows = int(min(max((2 * 1024 * 1024) // (c * 4), sub), 4096))
    if n >= sub:
        tn = max(min(_round_up(block_rows, sub), (n // sub) * sub), sub)
    else:
        tn = n  # tiny batch: block equals the full row extent

    num_tiles = -(-n // tn)
    tpc = -(-num_tiles // _NUM_CORES)  # row tiles per core

    def row_map(i, j):
        # Clamp overhanging nominal tiles onto the last real tile; the kernel
        # masks them out via the nominal row index, so they contribute 0.
        return (jnp.minimum(i * tpc + j, num_tiles - 1), 0)

    m2 = jnp.asarray(m_list, jnp.float32).reshape(1, c)
    cid = jnp.arange(c, dtype=jnp.int32).reshape(1, c)
    tgt = target.astype(jnp.int32).reshape(n, 1)
    gamma_arr = jnp.reshape(jnp.asarray(gamma, jnp.float32), (1,))

    # Explicit VMEM budget: double-buffered x/w tiles + f32 intermediates
    # (x_m, exp, masked selects).  v5e scoped default is only 16 MiB; cap at
    # 48 MiB so v7x (64 MiB physical) keeps headroom.
    need = (2 * 2 * tn * c * in_itemsize    # x, w (double-buffered)
            + 4 * tn * c * 4                # f32 temporaries
            + 2 * tn * 4)                   # label column
    vmem_limit = int(min(48 * 2**20, max(32 * 2**20, 2 * need)))

    kernel = functools.partial(_dala_kernel, num_rows=n, inv_n=1.0 / n,
                               tiles_per_core=tpc)

    # TODO(synk): for vocab-scale C, add a class-axis grid dimension with an
    # online (running max/sum) log-sum-exp instead of full-C row blocks.
    # TODO(synk): per-class `weight` (self.weight) is None in this config; a
    # weighted mean would change the reduction denominator.
    out = pl.pallas_call(
        kernel,
        out_shape=jax.ShapeDtypeStruct((_NUM_CORES * 8, 128), jnp.float32),
        grid=(_NUM_CORES, tpc),
        in_specs=[
            pl.BlockSpec(memory_space=pltpu.MemorySpace.SMEM),   # gamma scalar
            pl.BlockSpec((tn, c), row_map),                      # logits tile
            pl.BlockSpec((1, c), lambda i, j: (0, 0)),           # m_list (resident)
            pl.BlockSpec((1, c), lambda i, j: (0, 0)),           # class ids (resident)
            pl.BlockSpec((tn, 1), row_map),                      # int32 labels
            pl.BlockSpec((tn, c), row_map),                      # weights tile
        ],
        out_specs=pl.BlockSpec((8, 128), lambda i, j: (i, 0)),
        scratch_shapes=[
            pltpu.VMEM((1, 1), jnp.float32),  # running CE/N - gamma*entropy
        ],
        compiler_params=pltpu.CompilerParams(
            dimension_semantics=("parallel", "arbitrary"),
            vmem_limit_bytes=vmem_limit),
    )(gamma_arr, x, m2, cid, tgt, weights)

    # Sum the per-core partials (element [0,0] of each (8,128) block).
    return jnp.sum(out[::8, 0])


def make_m_list(cls_num_list, cls_loss, tau=1.0):
    """Deterministic re-implementation of DALA.__init__ parameter setup."""
    cls_num_list = jnp.asarray(cls_num_list, jnp.float32)
    cls_p_list = cls_num_list / jnp.sum(cls_num_list)
    t = cls_p_list / (jnp.power(cls_loss, 0.25) + 1e-05)
    m_list = tau * jnp.log(t)
    return m_list.reshape(1, -1)


def dala_loss_ref(x, m_list, target, weights, gamma):
    """Pure-JAX reference for correctness check."""
    x_m = x + m_list
    logp = jax.nn.log_softmax(x_m, axis=-1)
    ce = -jnp.mean(jnp.take_along_axis(logp, target[:, None], axis=-1))
    ent = jnp.sum(weights * jnp.log(weights + 1e-20))
    return ce - gamma * ent


if __name__ == "__main__":
    key = jax.random.PRNGKey(0)
    k1, k2, k3, k4 = jax.random.split(key, 4)

    # Small shapes: N=20 with block_rows=8 exercises multiple row tiles, a
    # ragged tail tile, and a fully masked overhang tile on the second "core";
    # C=16 exercises a non-128-multiple (unpadded) class axis.
    N, C = 20, 16

    # Deterministic "checkpoint" parameters for __init__.
    cls_num_list = jnp.arange(1, C + 1, dtype=jnp.float32) * 10.0   # class counts
    cls_loss = jax.random.uniform(k1, (C,), jnp.float32, 0.1, 2.0)  # per-class loss
    m_list = make_m_list(cls_num_list, cls_loss, tau=1.0)           # [1, C]

    # Forward inputs.
    x = jax.random.normal(k2, (N, C), jnp.float32)                  # logits
    target = jax.random.randint(k3, (N,), 0, C)                     # labels
    weights = jax.nn.softmax(jax.random.normal(k4, (N, C)), -1)     # positive weights
    gamma = jnp.float32(0.5)

    ref = dala_loss_ref(x, m_list, target, weights, gamma)

    # Explicit tiny tile (multi-tile path).
    out_small = jax.block_until_ready(
        dala_loss(x, m_list, target, weights, gamma, block_rows=8))
    assert jnp.allclose(out_small, ref, rtol=1e-5, atol=1e-5), (out_small, ref)

    # Adaptive tile (production path).
    out_auto = jax.block_until_ready(
        dala_loss(x, m_list, target, weights, gamma))
    assert jnp.allclose(out_auto, ref, rtol=1e-5, atol=1e-5), (out_auto, ref)

    # bf16 inputs: half the HBM read bytes; kernel upcasts to f32 internally,
    # so against an f32 reference on the same rounded values it stays tight.
    x_bf = x.astype(jnp.bfloat16)
    w_bf = weights.astype(jnp.bfloat16)
    ref_bf = dala_loss_ref(x_bf.astype(jnp.float32), m_list, target,
                           w_bf.astype(jnp.float32), gamma)
    out_bf = jax.block_until_ready(
        dala_loss(x_bf, m_list, target, w_bf, gamma))
    assert jnp.allclose(out_bf, ref_bf, rtol=1e-5, atol=1e-5), (out_bf, ref_bf)

    print("KERNEL_OK")
</pallas_src>

<mosaic_0001>
module attributes {stable_mosaic.version = 11 : i64} {
  func.func @_dala_kernel(%arg0: i32, %arg1: i32, %arg2: memref<1xf32, #tpu.memory_space<smem>>, %arg3: memref<8x16xf32, #tpu.memory_space<vmem>>, %arg4: memref<1x16xf32, #tpu.memory_space<vmem>>, %arg5: memref<1x16xi32, #tpu.memory_space<vmem>>, %arg6: memref<8x1xi32, #tpu.memory_space<vmem>>, %arg7: memref<8x16xf32, #tpu.memory_space<vmem>>, %arg8: memref<8x128xf32, #tpu.memory_space<vmem>>, %arg9: memref<1x1xf32, #tpu.memory_space<vmem>>) attributes {dimension_semantics = [#tpu.dimension_semantics<parallel>, #tpu.dimension_semantics<arbitrary>], iteration_bounds = array<i64: 2, 2>, scalar_prefetch = 0 : i64, scratch_operands = 1 : i64, tpu.core_type = #tpu.core_type<tc>, window_params = [{transform_indices = @transform_0, window_bounds = array<i64: 1>}, {transform_indices = @transform_1, window_bounds = array<i64: 8, 16>}, {pipeline_mode = #tpu.pipeline_mode<synchronous>, transform_indices = @transform_2, window_bounds = array<i64: 1, 16>}, {pipeline_mode = #tpu.pipeline_mode<synchronous>, transform_indices = @transform_3, window_bounds = array<i64: 1, 16>}, {transform_indices = @transform_4, window_bounds = array<i64: 8, 1>}, {transform_indices = @transform_5, window_bounds = array<i64: 8, 16>}, {transform_indices = @transform_6, window_bounds = array<i64: 8, 128>}]} {
    %c0_i32 = arith.constant 0 : i32
    %0 = arith.cmpi eq, %arg1, %c0_i32 : i32
    %1 = arith.extui %0 : i1 to i32
    %c0_i32_0 = arith.constant 0 : i32
    %2 = arith.cmpi ne, %1, %c0_i32_0 : i32
    scf.if %2 {
      %cst_24 = arith.constant 0.000000e+00 : f32
      %60 = vector.broadcast %cst_24 : f32 to vector<1x1xf32>
      %c0_25 = arith.constant 0 : index
      %c0_26 = arith.constant 0 : index
      %61 = vector.load %arg9[%c0_25, %c0_26] : memref<1x1xf32, #tpu.memory_space<vmem>>, vector<1x1xf32>
      tpu.vector_store %arg9[%c0_25, %c0_26], %60 {strides = array<i32>} : memref<1x1xf32, #tpu.memory_space<vmem>>, vector<1x1xf32>,
    } else {
    }
    %c0 = arith.constant 0 : index
    %c0_1 = arith.constant 0 : index
    %3 = vector.load %arg3[%c0, %c0_1] : memref<8x16xf32, #tpu.memory_space<vmem>>, vector<8x16xf32>
    %c0_2 = arith.constant 0 : index
    %c0_3 = arith.constant 0 : index
    %4 = vector.load %arg4[%c0_2, %c0_3] : memref<1x16xf32, #tpu.memory_space<vmem>>, vector<1x16xf32>
    %5 = vector.broadcast %4 : vector<1x16xf32> to vector<8x16xf32>
    %6 = arith.addf %3, %5 : vector<8x16xf32>
    %c2_i32 = arith.constant 2 : i32
    %7 = arith.muli %arg0, %c2_i32 : i32
    %8 = arith.addi %7, %arg1 : i32
    %c8_i32 = arith.constant 8 : i32
    %9 = arith.muli %8, %c8_i32 : i32
    %10 = tpu.iota {dimensions = array<i32: 0>} : vector<8x1xi32>
    %11 = vector.broadcast %9 : i32 to vector<8x1xi32>
    %12 = arith.addi %11, %10 : vector<8x1xi32>
    %c20_i32 = arith.constant 20 : i32
    %13 = vector.broadcast %c20_i32 : i32 to vector<8x1xi32>
    %14 = arith.cmpi slt, %12, %13 : vector<8x1xi32>
    %c0_4 = arith.constant 0 : index
    %c0_5 = arith.constant 0 : index
    %15 = vector.load %arg5[%c0_4, %c0_5] : memref<1x16xi32, #tpu.memory_space<vmem>>, vector<1x16xi32>
    %c0_6 = arith.constant 0 : index
    %c0_7 = arith.constant 0 : index
    %16 = vector.load %arg6[%c0_6, %c0_7] : memref<8x1xi32, #tpu.memory_space<vmem>>, vector<8x1xi32>
    %17 = vector.broadcast %15 : vector<1x16xi32> to vector<8x16xi32>
    %18 = vector.broadcast %16 : vector<8x1xi32> to vector<8x16xi32>
    %19 = arith.cmpi eq, %17, %18 : vector<8x16xi32>
    %cst = arith.constant dense<0xFF800000> : vector<8xf32>
    %20 = vector.multi_reduction <maximumf>, %6, %cst [1] : vector<8x16xf32> to vector<8xf32>
    %21 = vector.shape_cast %20 : vector<8xf32> to vector<8x1xf32>
    %22 = vector.broadcast %21 : vector<8x1xf32> to vector<8x16xf32>
    %23 = arith.subf %6, %22 : vector<8x16xf32>
    %24 = math.exp %23 : vector<8x16xf32>
    %cst_8 = arith.constant dense<0.000000e+00> : vector<8xf32>
    %25 = vector.multi_reduction <add>, %24, %cst_8 [1] : vector<8x16xf32> to vector<8xf32>
    %26 = vector.shape_cast %25 : vector<8xf32> to vector<8x1xf32>
    %27 = math.log %26 : vector<8x1xf32>
    %28 = arith.addf %21, %27 : vector<8x1xf32>
    %cst_9 = arith.constant 0.000000e+00 : f32
    %29 = vector.broadcast %cst_9 : f32 to vector<8x16xf32>
    %30 = arith.select %19, %6, %29 : vector<8x16xi1>, vector<8x16xf32>
    %cst_10 = arith.constant dense<0.000000e+00> : vector<8xf32>
    %31 = vector.multi_reduction <add>, %30, %cst_10 [1] : vector<8x16xf32> to vector<8xf32>
    %32 = vector.shape_cast %31 : vector<8xf32> to vector<8x1xf32>
    %33 = arith.subf %28, %32 : vector<8x1xf32>
    %c0_11 = arith.constant 0 : index
    %c0_12 = arith.constant 0 : index
    %34 = vector.load %arg7[%c0_11, %c0_12] : memref<8x16xf32, #tpu.memory_space<vmem>>, vector<8x16xf32>
    %cst_13 = arith.constant 9.99999968E-21 : f32
    %35 = vector.broadcast %cst_13 : f32 to vector<8x16xf32>
    %36 = arith.addf %34, %35 : vector<8x16xf32>
    %37 = math.log %36 : vector<8x16xf32>
    %38 = arith.mulf %34, %37 : vector<8x16xf32>
    %cst_14 = arith.constant dense<0.000000e+00> : vector<8xf32>
    %39 = vector.multi_reduction <add>, %38, %cst_14 [1] : vector<8x16xf32> to vector<8xf32>
    %40 = vector.shape_cast %39 : vector<8xf32> to vector<8x1xf32>
    %c0_15 = arith.constant 0 : index
    %41 = memref.load %arg2[%c0_15] : memref<1xf32, #tpu.memory_space<smem>>
    %cst_16 = arith.constant 5.000000e-02 : f32
    %42 = vector.broadcast %cst_16 : f32 to vector<8x1xf32>
    %43 = arith.mulf %42, %33 : vector<8x1xf32>
    %44 = vector.broadcast %41 : f32 to vector<8x1xf32>
    %45 = arith.mulf %44, %40 : vector<8x1xf32>
    %46 = arith.subf %43, %45 : vector<8x1xf32>
    %cst_17 = arith.constant 0.000000e+00 : f32
    %47 = vector.broadcast %cst_17 : f32 to vector<8x1xf32>
    %48 = arith.select %14, %46, %47 : vector<8x1xi1>, vector<8x1xf32>
    %c0_18 = arith.constant 0 : index
    %c0_19 = arith.constant 0 : index
    %49 = vector.load %arg9[%c0_18, %c0_19] : memref<1x1xf32, #tpu.memory_space<vmem>>, vector<1x1xf32>
    %50 = vector.shape_cast %48 : vector<8x1xf32> to vector<1x8x1xf32>
    %cst_20 = arith.constant dense<0.000000e+00> : vector<1xf32>
    %51 = vector.multi_reduction <add>, %50, %cst_20 [1, 2] : vector<1x8x1xf32> to vector<1xf32>
    %52 = vector.shape_cast %51 : vector<1xf32> to vector<1x1x1xf32>
    %53 = vector.extract %52[0, 0, 0] : f32 from vector<1x1x1xf32>
    %54 = vector.broadcast %53 : f32 to vector<1x1xf32>
    %55 = arith.addf %49, %54 : vector<1x1xf32>
    %c0_21 = arith.constant 0 : index
    %c0_22 = arith.constant 0 : index
    %56 = vector.load %arg9[%c0_21, %c0_22] : memref<1x1xf32, #tpu.memory_space<vmem>>, vector<1x1xf32>
    tpu.vector_store %arg9[%c0_21, %c0_22], %55 {strides = array<i32>} : memref<1x1xf32, #tpu.memory_space<vmem>>, vector<1x1xf32>,
    %c1_i32 = arith.constant 1 : i32
    %57 = arith.cmpi eq, %arg1, %c1_i32 : i32
    %58 = arith.extui %57 : i1 to i32
    %c0_i32_23 = arith.constant 0 : i32
    %59 = arith.cmpi ne, %58, %c0_i32_23 : i32
    scf.if %59 {
      %c0_24 = arith.constant 0 : index
      %c0_25 = arith.constant 0 : index
      %60 = vector.load %arg9[%c0_24, %c0_25] : memref<1x1xf32, #tpu.memory_space<vmem>>, vector<1x1xf32>
      %61 = vector.shape_cast %60 : vector<1x1xf32> to vector<1x1xf32>
      %62 = vector.broadcast %61 : vector<1x1xf32> to vector<8x128xf32>
      %c0_26 = arith.constant 0 : index
      %c0_27 = arith.constant 0 : index
      %63 = vector.load %arg8[%c0_26, %c0_27] : memref<8x128xf32, #tpu.memory_space<vmem>>, vector<8x128xf32>
      tpu.vector_store %arg8[%c0_26, %c0_27], %62 {strides = array<i32>} : memref<8x128xf32, #tpu.memory_space<vmem>>, vector<8x128xf32>,
    } else {
    }
    return
  }
  func.func @transform_0(%arg0: i32, %arg1: i32) -> i32 {
    %c0_i32 = arith.constant 0 : i32
    %c0_i32_0 = arith.constant 0 : i32
    return %c0_i32 : i32
  }
  func.func @transform_1(%arg0: i32, %arg1: i32) -> (i32, i32) {
    %c2_i32 = arith.constant 2 : i32
    %0 = arith.muli %arg0, %c2_i32 : i32
    %1 = arith.addi %0, %arg1 : i32
    %c2_i32_0 = arith.constant 2 : i32
    %2 = arith.minsi %1, %c2_i32_0 : i32
    %c0_i32 = arith.constant 0 : i32
    %c0_i32_1 = arith.constant 0 : i32
    return %2, %c0_i32 : i32, i32
  }
  func.func @transform_2(%arg0: i32, %arg1: i32) -> (i32, i32) {
    %c0_i32 = arith.constant 0 : i32
    %c0_i32_0 = arith.constant 0 : i32
    %c0_i32_1 = arith.constant 0 : i32
    return %c0_i32, %c0_i32_0 : i32, i32
  }
  func.func @transform_3(%arg0: i32, %arg1: i32) -> (i32, i32) {
    %c0_i32 = arith.constant 0 : i32
    %c0_i32_0 = arith.constant 0 : i32
    %c0_i32_1 = arith.constant 0 : i32
    return %c0_i32, %c0_i32_0 : i32, i32
  }
  func.func @transform_4(%arg0: i32, %arg1: i32) -> (i32, i32) {
    %c2_i32 = arith.constant 2 : i32
    %0 = arith.muli %arg0, %c2_i32 : i32
    %1 = arith.addi %0, %arg1 : i32
    %c2_i32_0 = arith.constant 2 : i32
    %2 = arith.minsi %1, %c2_i32_0 : i32
    %c0_i32 = arith.constant 0 : i32
    %c0_i32_1 = arith.constant 0 : i32
    return %2, %c0_i32 : i32, i32
  }
  func.func @transform_5(%arg0: i32, %arg1: i32) -> (i32, i32) {
    %c2_i32 = arith.constant 2 : i32
    %0 = arith.muli %arg0, %c2_i32 : i32
    %1 = arith.addi %0, %arg1 : i32
    %c2_i32_0 = arith.constant 2 : i32
    %2 = arith.minsi %1, %c2_i32_0 : i32
    %c0_i32 = arith.constant 0 : i32
    %c0_i32_1 = arith.constant 0 : i32
    return %2, %c0_i32 : i32, i32
  }
  func.func @transform_6(%arg0: i32, %arg1: i32) -> (i32, i32) {
    %c0_i32 = arith.constant 0 : i32
    %c0_i32_0 = arith.constant 0 : i32
    return %arg0, %c0_i32 : i32, i32
  }
}

</mosaic_0001>

<bundles_post_ra>
// kernel: dala_loss.1
= control target key start
LH: loop header
LB: loop body
LE: loop exit
PB: predicated region body
PF: predicated region fallthrough
CT: control target
= control target key end

     0   :  { %s732_s23 = smov 0   ;;  %s734_s24 = smov 0   ;;  %s812_s0 = inlined_call_operand.<no memory space> [shape: f32[1], index: 0, kind: input, shape index: {}]   ;;  %s813_s1 = inlined_call_operand.vmem [shape: f32[20,16], index: 1, kind: input, shape index: {}]   ;;  %s814_s2 = inlined_call_operand.vmem [shape: f32[1,16], index: 2, kind: input, shape index: {}]   ;;  %s815_s3 = inlined_call_operand.vmem [shape: s32[1,16], index: 3, kind: input, shape index: {}]   ;;  %s816_s4 = inlined_call_operand.vmem [shape: s32[20,1], index: 4, kind: input, shape index: {}]   ;;  %s817_s5 = inlined_call_operand.vmem [shape: f32[20,16], index: 5, kind: input, shape index: {}]   ;;  %s818_s6 = inlined_call_operand.vmem [shape: f32[16,128], index: 6, kind: output, shape index: {}]  }
   0x1   :  { %11 = sst [smem:[#allocation3]] %s812_s0  ;;  %s736_s25 = smov 0  }
   0x2   :  { %s738_s26 = smov 0   ;;  %s740_s27 = smov 0  }
   0x3 LB: > { %s26_s0 = sadd.s32 1, %s681_s25  ;;  %s29_s28 = sadd.s32 1, %s685_s26  ;;  %s689_s27 = sphi %s740_s27, %s17_s27   ;;  %s685_s26 = sphi %s738_s26, %s822_s26   ;;  %s681_s25 = sphi %s736_s25, %s821_s25   ;;  %s677_s24 = sphi %s734_s24, %s820_s24   ;;  %s673_s23 = sphi %s732_s23, %s819_s23  }
   0x4   : > { %p27_p0 = scmp.ge.s32.totalorder %s26_s0, 2  ;;  %p572_p1 = scmp.ge.s32.totalorder %s689_s27, 1 }
   0x5   : > { %p290_p2 = scmp.lt.s32.totalorder %s689_s27, 5 }
   0x6   : > { %s824_s0 = smov (%p27_p0, %s26_s0), 0  ;;  %s826_s28 = smov (!%p27_p0, %s29_s28), %s685_s26 }
   0x7   : > { %p291_p3 = pnand %p572_p1, %p290_p2  ;;  %p31_p4 = scmp.ge.s32.totalorder %s826_s28, 2 }
   0x8   : > { %s573_s29 = sshll.u32 (!%p291_p3), %s677_s24, 1  ;;  %p374_p5 = scmp.lt.s32.totalorder (!%p291_p3), %s677_s24, 1 }
   0x9   : > { %s828_s28 = smov (%p31_p4, %s826_s28), 0  ;;  %294 = sbr.rel (%p291_p3) target bundleno = 695 (0x2b7), region = 44 }
   0xa   : > { %s765_s30 = sadd.s32 (!%p291_p3), %s673_s23, %s573_s29  ;;  %p589_p7 = scmp.ne.s32.totalorder (!%p291_p3), %s673_s23, 0 }
   0xb   : > { %p340_p6 = scmp.lt.s32.totalorder (!%p291_p3), %s765_s30, 2 }
  0x10   : > { %s830_s24 = smov (!%p374_p5, %s677_s24), 1  ;;  %381 = sbr.rel (%p589_p7) target bundleno = 23 (0x17), region = 48 }
  0x11   : > { %s341_s7 = scalar_select %p340_p6, %s765_s30, 2 }
  0x12   : > { %s588_s8 = sshll.u32 %s830_s24, 3  ;;  %vm382_vm0 = vcmask (!%p589_p7), 0   ;;  %v691_v0 = vmov (!%p589_p7), 0.0  }
  0x13   : > { %s832_s7 = smov (!%p340_p6, %s341_s7), 2  ;;  %s772_s11 = scalar_lea.vmem %s818_s6, %s588_s8  ;;  %383 = vst.msk [vmem:[#allocation2] sm:$0x1] (!%p589_p7), %vm382_vm0, %v691_v0 }
  0x14   : > { %s577_s12 = sshll.u32 %s832_s7, 3 }
  0x15   : > { %s345_s15 = scalar_lea.vmem %s813_s1, %s577_s12  ;;  %s357_s18 = scalar_lea.vmem %s816_s4, %s577_s12 }
  0x16   : > { %s369_s21 = scalar_lea.vmem %s817_s5, %s577_s12 }
  0x17 PF: > { %v384_v1 = vld [vmem:[%s345_s15] sm:$0xff]  ;;  %vm411_vm1 = vcmask 130048   ;;  %v692_v4 = vmov 0   ;;  %s437_s8 = sld [smem:[#allocation3]]  ;;  %v396_v24 = vlaneseq  ;;  %s592_s9 = sshll.u32 %s765_s30, 3  ;;  %vm444_vm4 = vcmask 7168  }
  0x18   : > { %v590_v2 = vld [vmem:[%s814_s2] ss:$0 sm:$0xff]  ;;  %643 = vset.pattern.permute.xlu0 %v692_v4  ;;  %v398_v28 = vstv %s592_s9  ;;  %vm457_vm5 = vcmask 0   ;;  %p594_p8 = scmp.ne.s32.totalorder %s673_s23, 1 }
  0x19   : > { %v392_v3 = vadd.f32 %v590_v2, %v384_v1  ;;  %v402_v6 = vld [vmem:[%s357_s18] sm:$0xff]  ;;  %v397_v26 = vshrl.u32 %v396_v24, 7  ;;  %v693_v50 = vmov (!%p594_p8), 0  }
  0x1a   : > { %v429_v7 = vld [vmem:[%s369_s21] sm:$0xff] }
  0x1b   : > { %v412_v5 = vsel %vm411_vm1, %v392_v3, -inf  ;;  %v430_v8 = vadd.f32 1e-20, %v429_v7  ;;  %v593_v12 = vld [vmem:[%s815_s3] ss:$0 sm:$0xff]  ;;  %v399_v32 = vadd.s32 %v398_v28, %v397_v26 }
  0x1c   : > { %413 = vmax.xlane.f32.xlu0 %v412_v5  ;;  %v443_v46 = vld [vmem:[#allocation2] sm:$0x1] }
  0x1d   : > { %644 = vlog2.f32 %v430_v8  ;;  %v439_v29 = vstv %s437_s8  ;;  %vm400_vm3 = vcmp.lt.s32.totalorder %v399_v32, 20 }
  0x27   : > { %v645_v14 = vpop.eup %644 }
  0x28   : > { %v432_v15 = vmul.f32 0.6931472, %v645_v14 }
  0x2a   : > { %v433_v20 = vmul.f32 %v432_v15, %v429_v7 }
  0x2c   : > { %v434_v21 = vsel %vm411_vm1, %v433_v20, 0.0 }
  0x32   : > { %408 = vperm.xlu0 %643, %v402_v6  }
  0x36   : > { %650 = vset.pattern.permute.xlu0 (!%p594_p8), %v693_v50 }
  0xa9   : > { %v414_v9 = vpop.xlane.xlu0 %413 }
  0xaa   : > { %v415_v10 = vsub.f32 %v392_v3, %v414_v9 }
  0xac   : > { %v416_v11 = vmul.f32 1.442695, %v415_v10 }
  0xae   : > { %646 = vpow2.f32 %v416_v11 }
  0xb1   : > { %v409_v13 = vpop.permute.xlu0 %408 }
  0xb2   : > { %vm410_vm2 = vcmp.eq.s32.totalorder %v593_v12, %v409_v13 }
  0xb3   : > { %v424_v17 = vsel %vm410_vm2, %v392_v3, 0.0 }
  0xb4   : > { %v425_v19 = vsel %vm411_vm1, %v424_v17, 0.0 }
  0xb8   : > { %v647_v16 = vpop.eup %646 }
  0xb9   : > { %v418_v18 = vsel %vm411_vm1, %v647_v16, 0.0 }
  0xba   : > { %419 = vadd.xlane.f32.xlu1 %v418_v18 }
  0xbe   : > { %426 = vadd.xlane.f32.xlu1 %v425_v19 }
  0xc2   : > { %435 = vadd.xlane.f32.xlu1 %v434_v21 }
 0x147   : > { %v420_v22 = vpop.xlane.xlu1 %419 }
 0x148   : > { %648 = vlog2.f32 %v420_v22 }
 0x14b   : > { %v427_v23 = vpop.xlane.xlu1 %426 }
 0x14f   : > { %v436_v30 = vpop.xlane.xlu1 %435 }
 0x150   : > { %v440_v34 = vmul.f32 %v439_v29, %v436_v30 }
 0x152   : > { %v649_v25 = vpop.eup %648 }
 0x153   : > { %v422_v27 = vmul.f32 0.6931472, %v649_v25 }
 0x155   : > { %v423_v31 = vadd.f32 %v422_v27, %v414_v9 }
 0x157   : > { %v428_v33 = vsub.f32 %v423_v31, %v427_v23 }
 0x159   : > { %v438_v35 = vmul.f32 0.05, %v428_v33 }
 0x15b   : > { %v441_v36 = vsub.f32 %v438_v35, %v440_v34 }
 0x15d   : > { %v442_v37 = vsel %vm400_vm3, %v441_v36, 0.0 }
 0x15e   : > { %v445_v38 = vsel %vm444_vm4, %v442_v37, 0.0 }
 0x15f   : > { %446 = vadd.xlane.f32.xlu1 %v445_v38 }
 0x1ec   : > { %v447_v39 = vpop.xlane.xlu1 %446 }
 0x1ed   : > { %v448_v40 = vrot.slane %v447_v39, 4 }
 0x1ef   : > { %v449_v41 = vadd.f32 %v448_v40, %v447_v39 }
 0x1f1   : > { %v450_v42 = vrot.slane %v449_v41, 2 }
 0x1f3   : > { %v451_v43 = vadd.f32 %v450_v42, %v449_v41 }
 0x1f5   : > { %v452_v44 = vrot.slane %v451_v43, 1 }
 0x1f7   : > { %v453_v45 = vadd.f32 %v452_v44, %v451_v43 }
 0x1f9   : > { %598 = vpush %v453_v45 }
 0x228   : > { %462 = sbr.rel (%p594_p8) target bundleno = 695 (0x2b7), region = 52 }
 0x22a   : > { %s599_s30 = spop %598 }
 0x22b   : > { %v455_v47 = vstv %s599_s30 }
 0x22c   : > { %v456_v48 = vadd.f32 %v455_v47, %v443_v46 }
 0x22e   : > { %458 = vst.msk [vmem:[#allocation2] sm:$0x1] %vm457_vm5, %v456_v48 }
 0x235   : > { %v595_v49 = vld [vmem:[#allocation2] ss:$0 sm:$0xff] }
 0x236   : > { %470 = vperm.xlu0 %650, %v595_v49  }
 0x2b5   : > { %v471_v51 = vpop.permute.xlu0 %470 }
 0x2b6   : > { %473 = vst [vmem:[%s772_s11] sm:$0xff] %v471_v51 }
 0x2b7 PF: > { %s17_s27 = sadd.s32 1, %s689_s27   ;;  %s819_s23 = smov %s681_s25 }
 0x2b8   : > { %p14_p9 = scmp.ge.s32.totalorder %s17_s27, 6   ;;  %s820_s24 = smov %s685_s26 }
 0x2b9   : > { %s821_s25 = smov %s824_s0  ;;  %s822_s26 = smov %s828_s28 }
 0x2ba   :  { %16 = sbr.rel (!%p14_p9) target bundleno = 3 (0x3), region = 88 }

</bundles_post_ra>
